<compile_context>
chip_gen: v5e
topology: v5e:2x2
jax: 0.10.0
libtpu: 0.0.40
codegen_flags: <defaults>
</compile_context>

<pallas_src>
import jax
import jax.numpy as jnp
from jax.experimental import pallas as pl
from jax.experimental.pallas import tpu as pltpu


def _adaptive_kernel(w_ref, x_ref, o_ref):
    # w_ref: SMEM (1,) scalar weight; x_ref / o_ref: VMEM tiles.
    o_ref[...] = jnp.tanh(w_ref[0] * x_ref[...])


def adaptive_function_forward(x, weight, *, cols=1024, max_tile_rows=512):
    """tanh(weight * x) for arbitrary-shaped float32 x; weight has shape (1,)."""
    orig_shape = x.shape
    total = 1
    for d in orig_shape:
        total *= int(d)

    # Flatten to 1-D, then re-chunk as a lane-dense [rows_padded, cols] slab.
    rows = -(-total // cols)                               # ceil(total / cols)
    rows8 = ((rows + 7) // 8) * 8                          # sublane multiple of 8
    tile_rows = min(max_tile_rows, rows8)                  # <= 2 MiB f32 per tile
    rows_padded = ((rows8 + tile_rows - 1) // tile_rows) * tile_rows
    padded_total = rows_padded * cols

    x_flat = x.reshape(-1)
    if padded_total != total:
        # Zero padding is harmless (tanh(w*0) = 0) and sliced off afterwards.
        x_flat = jnp.pad(x_flat, (0, padded_total - total))
    x2d = x_flat.reshape(rows_padded, cols)

    grid = (rows_padded // tile_rows,)

    out2d = pl.pallas_call(
        _adaptive_kernel,
        out_shape=jax.ShapeDtypeStruct((rows_padded, cols), x.dtype),
        grid_spec=pl.GridSpec(
            grid=grid,
            in_specs=[
                pl.BlockSpec(memory_space=pltpu.MemorySpace.SMEM),   # scalar weight
                pl.BlockSpec((tile_rows, cols), lambda i: (i, 0)),   # x tile
            ],
            out_specs=pl.BlockSpec((tile_rows, cols), lambda i: (i, 0)),
        ),
        compiler_params=pltpu.CompilerParams(
            dimension_semantics=("parallel",),   # v7x: shard row-tiles across 2 TCs
        ),
    )(weight, x2d)

    out_flat = out2d.reshape(-1)
    if padded_total != total:
        out_flat = out_flat[:total]
    return out_flat.reshape(orig_shape)


if __name__ == "__main__":
    key = jax.random.PRNGKey(0)
    B, C, H, W = 2, 4, 16, 16
    x = jax.random.normal(key, (B, C, H, W), dtype=jnp.float32)

    # Deterministic parameter init matching nn.Parameter(torch.ones(1)).
    weight = jnp.ones((1,), dtype=jnp.float32)

    y = adaptive_function_forward(x, weight)
    jax.block_until_ready(y)

    # Pure-JAX reference check.
    y_ref = jnp.tanh(weight[0] * x)
    assert y.shape == (B, C, H, W)
    assert jnp.allclose(y, y_ref, atol=1e-6, rtol=1e-6)

    print("KERNEL_OK")
</pallas_src>

<mosaic_0001>
module attributes {stable_mosaic.version = 11 : i64} {
  func.func @_adaptive_kernel(%arg0: i32, %arg1: memref<1xf32, #tpu.memory_space<smem>>, %arg2: memref<8x1024xf32, #tpu.memory_space<vmem>>, %arg3: memref<8x1024xf32, #tpu.memory_space<vmem>>) attributes {dimension_semantics = [#tpu.dimension_semantics<parallel>], iteration_bounds = array<i64: 1>, scalar_prefetch = 0 : i64, scratch_operands = 0 : i64, tpu.core_type = #tpu.core_type<tc>, window_params = [{transform_indices = @transform_0, window_bounds = array<i64: 1>}, {transform_indices = @transform_1, window_bounds = array<i64: 8, 1024>}, {transform_indices = @transform_2, window_bounds = array<i64: 8, 1024>}]} {
    %c0 = arith.constant 0 : index
    %0 = memref.load %arg1[%c0] : memref<1xf32, #tpu.memory_space<smem>>
    %c0_0 = arith.constant 0 : index
    %c0_1 = arith.constant 0 : index
    %1 = vector.load %arg2[%c0_0, %c0_1] : memref<8x1024xf32, #tpu.memory_space<vmem>>, vector<8x1024xf32>
    %2 = vector.broadcast %0 : f32 to vector<8x1024xf32>
    %3 = arith.mulf %2, %1 : vector<8x1024xf32>
    %4 = math.tanh %3 : vector<8x1024xf32>
    %c0_2 = arith.constant 0 : index
    %c0_3 = arith.constant 0 : index
    %5 = vector.load %arg3[%c0_2, %c0_3] : memref<8x1024xf32, #tpu.memory_space<vmem>>, vector<8x1024xf32>
    tpu.vector_store %arg3[%c0_2, %c0_3], %4 {strides = array<i32>} : memref<8x1024xf32, #tpu.memory_space<vmem>>, vector<8x1024xf32>,
    return
  }
  func.func @transform_0(%arg0: i32) -> i32 {
    %c0_i32 = arith.constant 0 : i32
    %c0_i32_0 = arith.constant 0 : i32
    return %c0_i32 : i32
  }
  func.func @transform_1(%arg0: i32) -> (i32, i32) {
    %c0_i32 = arith.constant 0 : i32
    %c0_i32_0 = arith.constant 0 : i32
    return %arg0, %c0_i32 : i32, i32
  }
  func.func @transform_2(%arg0: i32) -> (i32, i32) {
    %c0_i32 = arith.constant 0 : i32
    %c0_i32_0 = arith.constant 0 : i32
    return %arg0, %c0_i32 : i32, i32
  }
}

</mosaic_0001>

<bundles_post_ra>
// kernel: tpu_custom_call.1
= control target key start
LH: loop header
LB: loop body
LE: loop exit
PB: predicated region body
PF: predicated region fallthrough
CT: control target
= control target key end

     0   :  { %8 = vsyncpa [#allocation4], 0  ;;  %s174_s0 = inlined_call_operand.<no memory space> [shape: f32[1], index: 0, kind: input, shape index: {}]   ;;  %s175_s1 = inlined_call_operand.hbm [shape: f32[8,1024], index: 1, kind: input, shape index: {}]   ;;  %s176_s2 = inlined_call_operand.hbm [shape: f32[8,1024], index: 2, kind: output, shape index: {}]  }
   0x1   :  { %9 = vsyncpa [#allocation5], 0  ;;  %s17_s11 = sshll.u32 %s175_s1, 4  ;;  %s148_s12 = smov [#allocation3]   ;;  %s18_s11 = int_to_ptr.hbm [resolvable:$true] %s17_s11 }
   0x2   :  { %s19_s13 = sshll.u32 %s148_s12, 4  ;;  %s20_s13 = int_to_ptr.vmem [resolvable:$true] %s19_s13 }
   0x3   :  { %22 = dma.hbm_to_vmem [thread:$0]  %s18_s11, 1024, %s20_s13, [#allocation4]  }
   0x4   :  { %144 = dma.done.wait [#allocation4], 1024  }
   0x5   :  { %145 = vsyncadd [#allocation4], 4294966272  ;;  %v36_v0 = vstv %s174_s0  ;;  %v28_v1 = vld [vmem:[#allocation3] sm:$0xff]  ;;  %v29_v2 = vld [vmem:[#allocation3 + $0x8] sm:$0xff]  ;;  %s149_s0 = smov [#allocation6]   ;;  %s68_s18 = sshll.u32 %s176_s2, 4  ;;  %s69_s18 = int_to_ptr.hbm [resolvable:$true] %s68_s18 }
   0x6   :  { %v30_v3 = vld [vmem:[#allocation3 + $0x10] sm:$0xff]  ;;  %v37_v4 = vmul.f32 %v36_v0, %v28_v1  ;;  %v38_v5 = vmul.f32 %v36_v0, %v29_v2  ;;  %v31_v7 = vld [vmem:[#allocation3 + $0x18] sm:$0xff]  ;;  %v32_v8 = vld [vmem:[#allocation3 + $0x20] sm:$0xff]  ;;  %s66_s1 = sshll.u32 %s149_s0, 4  ;;  %s67_s1 = int_to_ptr.vmem [resolvable:$true] %s66_s1 }
   0x7   :  { %v39_v6 = vmul.f32 %v36_v0, %v30_v3  ;;  %v33_v9 = vld [vmem:[#allocation3 + $0x28] sm:$0xff]  ;;  %v40_v10 = vmul.f32 %v36_v0, %v31_v7  ;;  %v34_v11 = vld [vmem:[#allocation3 + $0x30] sm:$0xff]  ;;  %v41_v12 = vmul.f32 %v36_v0, %v32_v8  ;;  %v35_v13 = vld [vmem:[#allocation3 + $0x38] sm:$0xff] }
   0x8   :  { %80 = vtanh.f32 %v37_v4  ;;  %v42_v14 = vmul.f32 %v36_v0, %v33_v9  ;;  %v43_v15 = vmul.f32 %v36_v0, %v34_v11  ;;  %v44_v16 = vmul.f32 %v36_v0, %v35_v13 }
   0x9   :  { %82 = vtanh.f32 %v38_v5 }
   0xa   :  { %84 = vtanh.f32 %v39_v6 }
   0xb   :  { %86 = vtanh.f32 %v40_v10 }
   0xc   :  { %88 = vtanh.f32 %v41_v12 }
   0xd   :  { %90 = vtanh.f32 %v42_v14 }
   0xe   :  { %v81_v17 = vpop.eup %80  ;;  %92 = vtanh.f32 %v43_v15 }
   0xf   :  { %v83_v18 = vpop.eup %82  ;;  %53 = vst [vmem:[#allocation6] sm:$0xff] %v81_v17  ;;  %94 = vtanh.f32 %v44_v16 }
  0x10   :  { %v85_v19 = vpop.eup %84  ;;  %54 = vst [vmem:[#allocation6 + $0x8] sm:$0xff] %v83_v18 }
  0x11   :  { %v87_v20 = vpop.eup %86  ;;  %55 = vst [vmem:[#allocation6 + $0x10] sm:$0xff] %v85_v19 }
  0x12   :  { %v89_v21 = vpop.eup %88  ;;  %56 = vst [vmem:[#allocation6 + $0x18] sm:$0xff] %v87_v20 }
  0x13   :  { %v91_v22 = vpop.eup %90  ;;  %57 = vst [vmem:[#allocation6 + $0x20] sm:$0xff] %v89_v21 }
  0x14   :  { %v93_v23 = vpop.eup %92  ;;  %58 = vst [vmem:[#allocation6 + $0x28] sm:$0xff] %v91_v22 }
  0x15   :  { %v95_v24 = vpop.eup %94  ;;  %59 = vst [vmem:[#allocation6 + $0x30] sm:$0xff] %v93_v23 }
  0x16   :  { %60 = vst [vmem:[#allocation6 + $0x38] sm:$0xff] %v95_v24 }
  0x17   :  { %71 = dma.vmem_to_hbm [thread:$0]  %s67_s1, 1024, %s69_s18, [#allocation5]  }
  0x18   :  { %146 = dma.done.wait [#allocation5], 1024  }
  0x19   :  { %147 = vsyncadd [#allocation5], 4294966272 }
  0x1a   :  { %76 = vsyncpa [#allocation4], 1 }
  0x1b   :  { %77 = vsyncpa [#allocation5], 1 }

</bundles_post_ra>
